<compile_context>
chip_gen: v7x
topology: tpu7x:2x2x1
jax: 0.10.0
libtpu: 0.0.40
codegen_flags: <defaults>
</compile_context>

<pallas_src>
import functools

import jax
import jax.numpy as jnp
from jax.experimental import pallas as pl
from jax.experimental.pallas import tpu as pltpu


# --------------------------------------------------------------------------- #
# Kernels
# --------------------------------------------------------------------------- #
def _fused_conv_gate_kernel(x_ref, w_ref, b_ref, phT_ref, ph_ref, pwT_ref,
                            pw_ref, o_ref, *, cout_half, hp, wp):
    """Complex 1x1 conv + bias + freq/time gating for one batch slab.

    x_ref  : (1, Cin, HW)   channels = [real | imag]           (input dtype)
    w_ref  : (Cout, Cin)    block weight, bf16                  (resident)
    b_ref  : (Cout, 1)      effective bias, f32                 (resident)
    phT_ref: (HW, Hp)  0/1  sums over W per freq row            (resident)
    ph_ref : (Hp, HW)  0/1  broadcasts a per-row value to HW    (resident)
    pwT_ref: (HW, Wp)  0/1  sums over H per time column         (resident)
    pw_ref : (Wp, HW)  0/1  broadcasts a per-column value to HW (resident)
    o_ref  : (1, Cout, HW)  gated output, channels = [real | imag]

    TODO(synk): FreqGate / TemporalGate class definitions are not in the given
    source; implemented as sigmoid(mean-pool) gates over the time / freq axes.
    """
    x = x_ref[0].astype(jnp.bfloat16)                       # (Cin, HW)
    y = jnp.dot(w_ref[...], x, preferred_element_type=jnp.float32)
    y = y + b_ref[...]                                      # (Cout, HW) f32

    # Gate means via MXU pooling matmuls: keeps the hot data lane-dense
    # (HW on lanes) and avoids any in-kernel reshape to (Cout, Hp, Wp).
    freq = jax.nn.sigmoid(
        jnp.dot(y, phT_ref[...], preferred_element_type=jnp.float32)
        * (1.0 / wp))                                       # (Cout, Hp)
    time = jax.nn.sigmoid(
        jnp.dot(y, pwT_ref[...], preferred_element_type=jnp.float32)
        * (1.0 / hp))                                       # (Cout, Wp)
    scale = (jnp.dot(freq, ph_ref[...], preferred_element_type=jnp.float32) *
             jnp.dot(time, pw_ref[...], preferred_element_type=jnp.float32))

    r_g = y[:cout_half] * scale[:cout_half]                 # gated real
    # NOTE: reproduces the reference quirk `imag = real * scale_imag`
    # (the already-gated real part, scaled by the imag gates).
    i_g = r_g * scale[cout_half:]
    o_ref[0, :cout_half] = r_g.astype(o_ref.dtype)          # lane-dense stores
    o_ref[0, cout_half:] = i_g.astype(o_ref.dtype)


def _cconv_matmul_kernel(x_ref, w_ref, b_ref, y_ref):
    """Fallback stage 1: complex 1x1 conv as a single MXU block matmul + bias."""
    x = x_ref[0].astype(jnp.bfloat16)                       # (Cin, TN)
    y = jnp.dot(w_ref[...], x, preferred_element_type=jnp.float32)
    y_ref[0] = (y + b_ref[...]).astype(y_ref.dtype)


def _gate_kernel(y_ref, o_ref):
    """Fallback stage 2: freq/time gating of paired real/imag channel blocks.

    y_ref / o_ref: (1, 2, c_blk, Hp, Wp); axis 1 is [real, imag] so each block
    carries the matching real channels needed by the imag gate.
    TODO(synk): with Wp < 128 these stores are not lane-dense; the fused path
    (flat HW layout) is used whenever the slab fits VMEM.
    """
    r = y_ref[0, 0].astype(jnp.float32)                     # (c_blk, Hp, Wp)
    i = y_ref[0, 1].astype(jnp.float32)

    freq_r = jax.nn.sigmoid(jnp.mean(r, axis=2, keepdims=True))   # (c, Hp, 1)
    time_r = jax.nn.sigmoid(jnp.mean(r, axis=1, keepdims=True))   # (c, 1, Wp)
    r_g = r * (freq_r * time_r)

    freq_i = jax.nn.sigmoid(jnp.mean(i, axis=2, keepdims=True))
    time_i = jax.nn.sigmoid(jnp.mean(i, axis=1, keepdims=True))
    i_g = r_g * (freq_i * time_i)

    o_ref[0, 0] = r_g.astype(o_ref.dtype)
    o_ref[0, 1] = i_g.astype(o_ref.dtype)


# --------------------------------------------------------------------------- #
# Wrapper
# --------------------------------------------------------------------------- #
def _vmem_capacity_bytes():
    try:
        cap = getattr(pltpu.get_tpu_info(), "vmem_capacity_bytes", None)
        if cap:
            return int(cap)
    except Exception:
        pass
    return 64 * 1024 * 1024          # conservative (v7x per-core VMEM)


def cconv2d_forward(x, wr, wi, br, bi, *, padding=(0, 0), causal=True):
    """Forward of cConv2d (kernel_size=(1,1), stride=(1,1), groups=1,
    complex_axis=1) with the hot path in a single fused Pallas kernel."""
    B, C, H, W = x.shape
    cin_half = C // 2
    cout_half = wr.shape[1]
    cin, cout = 2 * cin_half, 2 * cout_half
    in_dtype = x.dtype
    f32 = jnp.float32

    # F.pad semantics of the PyTorch forward + the Conv2d(padding=[p0, 0])
    # freq-axis padding (for a 1x1 kernel that is plain input zero-padding).
    # Single fused jnp.pad, skipped entirely when there is no padding.
    # TODO(synk): fold nonzero padding into the kernel index_map to also avoid
    # this one extra HBM pass.
    if padding[1] != 0 and causal:
        pad_w = (padding[1], 0)
    else:
        pad_w = (padding[1], padding[0])
    pad_h = (padding[0], padding[0])
    if pad_w != (0, 0) or pad_h != (0, 0):
        x = jnp.pad(x, ((0, 0), (0, 0), pad_h, pad_w))
    Hp, Wp = x.shape[2], x.shape[3]
    HW = Hp * Wp

    # Fused block weight (bf16 for the MXU) / effective bias:
    #   real_out = xr@wr - xi@wi + (br - bi)
    #   imag_out = xr@wi + xi@wr + (br + bi)
    w_eff = jnp.concatenate(
        [jnp.concatenate([wr.T, -wi.T], axis=1),
         jnp.concatenate([wi.T, wr.T], axis=1)], axis=0).astype(jnp.bfloat16)
    b_eff = jnp.concatenate([(br - bi).T, (br + bi).T], axis=0).astype(f32)

    # NCHW -> (B, Cin, H*W) is a free reshape; channel halves are [real|imag].
    x3 = x.reshape(B, cin, HW)

    cap = _vmem_capacity_bytes()
    vmem_limit = int(cap * 0.75)
    budget = int(cap * 0.45)          # headroom for compiler scratch / spills
    xb = x.dtype.itemsize

    # Per-grid-step VMEM footprint of the fused path (double-buffered x/out,
    # resident-but-double-buffered weights/bias/pooling, plus f32 temporaries).
    fused_bytes = (2 * (cin + cout) * HW * xb
                   + 2 * (cout * cin * 2 + cout * 4)
                   + 2 * 2 * HW * (Hp + Wp) * 4
                   + 6 * cout * HW * 4)

    if fused_bytes <= budget:
        # ---------------- fused path: one pallas_call, no y round-trip ------
        hw_idx = jnp.arange(HW)
        row_ids = hw_idx // Wp
        col_ids = hw_idx % Wp
        phT = (row_ids[:, None] == jnp.arange(Hp)[None, :]).astype(f32)  # (HW,Hp)
        pwT = (col_ids[:, None] == jnp.arange(Wp)[None, :]).astype(f32)  # (HW,Wp)
        ph = phT.T                                                       # (Hp,HW)
        pw = pwT.T                                                       # (Wp,HW)

        cost = pl.CostEstimate(
            flops=int(2 * B * HW * cin * cout + 4 * B * cout * HW * (Hp + Wp)),
            transcendentals=int(B * cout * (Hp + Wp)),
            bytes_accessed=int(xb * B * (cin + cout) * HW
                               + 2 * cout * cin + 4 * cout
                               + 8 * HW * (Hp + Wp)))

        out = pl.pallas_call(
            functools.partial(_fused_conv_gate_kernel,
                              cout_half=cout_half, hp=Hp, wp=Wp),
            grid=(B,),
            in_specs=[
                pl.BlockSpec((1, cin, HW), lambda b: (b, 0, 0)),
                pl.BlockSpec((cout, cin), lambda b: (0, 0)),   # resident
                pl.BlockSpec((cout, 1), lambda b: (0, 0)),     # resident
                pl.BlockSpec((HW, Hp), lambda b: (0, 0)),      # resident
                pl.BlockSpec((Hp, HW), lambda b: (0, 0)),      # resident
                pl.BlockSpec((HW, Wp), lambda b: (0, 0)),      # resident
                pl.BlockSpec((Wp, HW), lambda b: (0, 0)),      # resident
            ],
            out_specs=pl.BlockSpec((1, cout, HW), lambda b: (b, 0, 0)),
            out_shape=jax.ShapeDtypeStruct((B, cout, HW), in_dtype),
            compiler_params=pltpu.CompilerParams(
                dimension_semantics=("parallel",),
                vmem_limit_bytes=vmem_limit),
            cost_estimate=cost,
        )(x3, w_eff, b_eff, phT, ph, pwT, pw)

        # TODO(synk): dispaly_feature_color is matplotlib plotting (side
        # effect only), intentionally skipped.
        return out.reshape(B, cout, Hp, Wp)

    # ---------------- fallback path: HW-tiled matmul + channel-tiled gate ---
    # Stage 1: tn sized against the budget including resident weight buffers.
    resident = 2 * (cout * cin * 2 + cout * 4)
    per_col = 2 * (cin * xb + cout * 4)
    max_cols = max(128, max(budget - resident, per_col * 128) // per_col)
    tn = HW if HW <= max_cols else max(128, (max_cols // 128) * 128)
    n_tiles = pl.cdiv(HW, tn)

    y = pl.pallas_call(
        _cconv_matmul_kernel,
        grid=(B, n_tiles),
        in_specs=[
            pl.BlockSpec((1, cin, tn), lambda b, n: (b, 0, n)),
            pl.BlockSpec((cout, cin), lambda b, n: (0, 0)),
            pl.BlockSpec((cout, 1), lambda b, n: (0, 0)),
        ],
        out_specs=pl.BlockSpec((1, cout, tn), lambda b, n: (b, 0, n)),
        out_shape=jax.ShapeDtypeStruct((B, cout, HW), f32),
        compiler_params=pltpu.CompilerParams(
            dimension_semantics=("parallel", "parallel"),
            vmem_limit_bytes=vmem_limit),
        cost_estimate=pl.CostEstimate(
            flops=int(2 * B * HW * cin * cout), transcendentals=0,
            bytes_accessed=int(xb * B * cin * HW + 4 * B * cout * HW
                               + 2 * cout * cin + 4 * cout)),
    )(x3, w_eff, b_eff)

    # Stage 2: gate on paired [real, imag] channel blocks (exact: gates are
    # per-channel; the imag gate needs the matching gated real channel).
    y5 = y.reshape(B, 2, cout_half, Hp, Wp)          # free reshape
    per_chan_pair = 80 * Hp * Wp                     # in+out dbl-buf + temps (B)
    c_blk = 1
    for d in range(cout_half, 0, -1):
        if cout_half % d == 0 and d * per_chan_pair <= budget:
            c_blk = d
            break

    out5 = pl.pallas_call(
        _gate_kernel,
        grid=(B, cout_half // c_blk),
        in_specs=[pl.BlockSpec((1, 2, c_blk, Hp, Wp),
                               lambda b, c: (b, 0, c, 0, 0))],
        out_specs=pl.BlockSpec((1, 2, c_blk, Hp, Wp),
                               lambda b, c: (b, 0, c, 0, 0)),
        out_shape=jax.ShapeDtypeStruct((B, 2, cout_half, Hp, Wp), in_dtype),
        compiler_params=pltpu.CompilerParams(
            dimension_semantics=("parallel", "parallel"),
            vmem_limit_bytes=vmem_limit),
    )(y5)
    return out5.reshape(B, cout, Hp, Wp)


# --------------------------------------------------------------------------- #
# Pure-JAX reference (same gate interpretation) for a correctness check
# --------------------------------------------------------------------------- #
def _reference_forward(x, wr, wi, br, bi):
    C = x.shape[1]
    ch = C // 2
    xr, xi = x[:, :ch], x[:, ch:]

    def conv(z, w, b):
        return jnp.einsum('bchw,co->bohw', z, w) + b[0][None, :, None, None]

    real = conv(xr, wr, br) - conv(xi, wi, bi)
    imag = conv(xr, wi, bi) + conv(xi, wr, br)
    scale_r = (jax.nn.sigmoid(jnp.mean(real, axis=3, keepdims=True)) *
               jax.nn.sigmoid(jnp.mean(real, axis=2, keepdims=True)))
    real_g = real * scale_r
    scale_i = (jax.nn.sigmoid(jnp.mean(imag, axis=3, keepdims=True)) *
               jax.nn.sigmoid(jnp.mean(imag, axis=2, keepdims=True)))
    imag_g = real_g * scale_i
    return jnp.concatenate([real_g, imag_g], axis=1)


if __name__ == "__main__":
    key = jax.random.PRNGKey(0)
    k1, k2, k3 = jax.random.split(key, 3)

    B, C_in, C_out, H, W = 2, 4, 4, 16, 16
    cin_half, cout_half = C_in // 2, C_out // 2

    x = jax.random.normal(k1, (B, C_in, H, W), dtype=jnp.float32)
    # PyTorch Conv2d weights are (Cout/2, Cin/2, 1, 1), init normal(std=0.05);
    # stored pre-transposed as (Cin/2, Cout/2) matmul weights for the 1x1 conv.
    wr = 0.05 * jax.random.normal(k2, (cin_half, cout_half), dtype=jnp.float32)
    wi = 0.05 * jax.random.normal(k3, (cin_half, cout_half), dtype=jnp.float32)
    br = jnp.zeros((1, cout_half), dtype=jnp.float32)   # nn.init.constant_(bias, 0)
    bi = jnp.zeros((1, cout_half), dtype=jnp.float32)

    out = cconv2d_forward(x, wr, wi, br, bi, padding=(0, 0), causal=True)
    out = jax.block_until_ready(out)
    assert out.shape == (B, C_out, H, W), out.shape

    ref = jax.block_until_ready(_reference_forward(x, wr, wi, br, bi))
    max_err = float(jnp.max(jnp.abs(out - ref)))
    assert max_err < 2e-2, f"max abs error vs reference: {max_err}"

    print("KERNEL_OK")
</pallas_src>

<mosaic_0001>
module attributes {stable_mosaic.version = 11 : i64} {
  func.func @_fused_conv_gate_kernel(%arg0: i32, %arg1: memref<1x4x256xf32, #tpu.memory_space<vmem>>, %arg2: memref<4x4xbf16, #tpu.memory_space<vmem>>, %arg3: memref<4x1xf32, #tpu.memory_space<vmem>>, %arg4: memref<256x16xf32, #tpu.memory_space<vmem>>, %arg5: memref<16x256xf32, #tpu.memory_space<vmem>>, %arg6: memref<256x16xf32, #tpu.memory_space<vmem>>, %arg7: memref<16x256xf32, #tpu.memory_space<vmem>>, %arg8: memref<1x4x256xf32, #tpu.memory_space<vmem>>) attributes {dimension_semantics = [#tpu.dimension_semantics<parallel>], iteration_bounds = array<i64: 2>, scalar_prefetch = 0 : i64, scratch_operands = 0 : i64, tpu.core_type = #tpu.core_type<tc>, window_params = [{transform_indices = @transform_0, window_bounds = array<i64: 1, 4, 256>}, {pipeline_mode = #tpu.pipeline_mode<synchronous>, transform_indices = @transform_1, window_bounds = array<i64: 4, 4>}, {pipeline_mode = #tpu.pipeline_mode<synchronous>, transform_indices = @transform_2, window_bounds = array<i64: 4, 1>}, {pipeline_mode = #tpu.pipeline_mode<synchronous>, transform_indices = @transform_3, window_bounds = array<i64: 256, 16>}, {pipeline_mode = #tpu.pipeline_mode<synchronous>, transform_indices = @transform_4, window_bounds = array<i64: 16, 256>}, {pipeline_mode = #tpu.pipeline_mode<synchronous>, transform_indices = @transform_5, window_bounds = array<i64: 256, 16>}, {pipeline_mode = #tpu.pipeline_mode<synchronous>, transform_indices = @transform_6, window_bounds = array<i64: 16, 256>}, {transform_indices = @transform_7, window_bounds = array<i64: 1, 4, 256>}]} {
    %c0 = arith.constant 0 : index
    %c0_0 = arith.constant 0 : index
    %c0_1 = arith.constant 0 : index
    %0 = vector.load %arg1[%c0, %c0_0, %c0_1] : memref<1x4x256xf32, #tpu.memory_space<vmem>>, vector<1x4x256xf32>
    %1 = vector.shape_cast %0 : vector<1x4x256xf32> to vector<4x256xf32>
    %2 = arith.truncf %1 : vector<4x256xf32> to vector<4x256xbf16>
    %c0_2 = arith.constant 0 : index
    %c0_3 = arith.constant 0 : index
    %3 = vector.load %arg2[%c0_2, %c0_3] : memref<4x4xbf16, #tpu.memory_space<vmem>>, vector<4x4xbf16>
    %cst = arith.constant dense<0.000000e+00> : vector<4x256xf32>
    %4 = tpu.matmul %3, %2, %cst {dimension_numbers = #tpu.dot_dimension_numbers<[1], [0], [0], [1], [0, 0, 1, 1], [], []>} : vector<4x4xbf16>, vector<4x256xbf16>, vector<4x256xf32> -> vector<4x256xf32>
    %c0_4 = arith.constant 0 : index
    %c0_5 = arith.constant 0 : index
    %5 = vector.load %arg3[%c0_4, %c0_5] : memref<4x1xf32, #tpu.memory_space<vmem>>, vector<4x1xf32>
    %6 = vector.broadcast %5 : vector<4x1xf32> to vector<4x256xf32>
    %7 = arith.addf %4, %6 : vector<4x256xf32>
    %c0_6 = arith.constant 0 : index
    %c0_7 = arith.constant 0 : index
    %8 = vector.load %arg4[%c0_6, %c0_7] : memref<256x16xf32, #tpu.memory_space<vmem>>, vector<256x16xf32>
    %cst_8 = arith.constant dense<0.000000e+00> : vector<4x16xf32>
    %9 = tpu.matmul %7, %8, %cst_8 {dimension_numbers = #tpu.dot_dimension_numbers<[1], [0], [0], [1], [0, 0, 1, 1], [], []>} : vector<4x256xf32>, vector<256x16xf32>, vector<4x16xf32> -> vector<4x16xf32>
    %cst_9 = arith.constant 6.250000e-02 : f32
    %10 = vector.broadcast %cst_9 : f32 to vector<4x16xf32>
    %11 = arith.mulf %9, %10 : vector<4x16xf32>
    %12 = arith.negf %11 : vector<4x16xf32>
    %13 = math.exp %12 : vector<4x16xf32>
    %cst_10 = arith.constant 1.000000e+00 : f32
    %14 = vector.broadcast %cst_10 : f32 to vector<4x16xf32>
    %15 = arith.addf %14, %13 : vector<4x16xf32>
    %16 = arith.divf %14, %15 : vector<4x16xf32>
    %c0_11 = arith.constant 0 : index
    %c0_12 = arith.constant 0 : index
    %17 = vector.load %arg6[%c0_11, %c0_12] : memref<256x16xf32, #tpu.memory_space<vmem>>, vector<256x16xf32>
    %cst_13 = arith.constant dense<0.000000e+00> : vector<4x16xf32>
    %18 = tpu.matmul %7, %17, %cst_13 {dimension_numbers = #tpu.dot_dimension_numbers<[1], [0], [0], [1], [0, 0, 1, 1], [], []>} : vector<4x256xf32>, vector<256x16xf32>, vector<4x16xf32> -> vector<4x16xf32>
    %cst_14 = arith.constant 6.250000e-02 : f32
    %19 = vector.broadcast %cst_14 : f32 to vector<4x16xf32>
    %20 = arith.mulf %18, %19 : vector<4x16xf32>
    %21 = arith.negf %20 : vector<4x16xf32>
    %22 = math.exp %21 : vector<4x16xf32>
    %cst_15 = arith.constant 1.000000e+00 : f32
    %23 = vector.broadcast %cst_15 : f32 to vector<4x16xf32>
    %24 = arith.addf %23, %22 : vector<4x16xf32>
    %25 = arith.divf %23, %24 : vector<4x16xf32>
    %c0_16 = arith.constant 0 : index
    %c0_17 = arith.constant 0 : index
    %26 = vector.load %arg5[%c0_16, %c0_17] : memref<16x256xf32, #tpu.memory_space<vmem>>, vector<16x256xf32>
    %cst_18 = arith.constant dense<0.000000e+00> : vector<4x256xf32>
    %27 = tpu.matmul %16, %26, %cst_18 {dimension_numbers = #tpu.dot_dimension_numbers<[1], [0], [0], [1], [0, 0, 1, 1], [], []>} : vector<4x16xf32>, vector<16x256xf32>, vector<4x256xf32> -> vector<4x256xf32>
    %c0_19 = arith.constant 0 : index
    %c0_20 = arith.constant 0 : index
    %28 = vector.load %arg7[%c0_19, %c0_20] : memref<16x256xf32, #tpu.memory_space<vmem>>, vector<16x256xf32>
    %cst_21 = arith.constant dense<0.000000e+00> : vector<4x256xf32>
    %29 = tpu.matmul %25, %28, %cst_21 {dimension_numbers = #tpu.dot_dimension_numbers<[1], [0], [0], [1], [0, 0, 1, 1], [], []>} : vector<4x16xf32>, vector<16x256xf32>, vector<4x256xf32> -> vector<4x256xf32>
    %30 = arith.mulf %27, %29 : vector<4x256xf32>
    %31 = vector.extract_strided_slice %7 {offsets = [0, 0], sizes = [2, 256], strides = [1, 1]} : vector<4x256xf32> to vector<2x256xf32>
    %32 = vector.extract_strided_slice %30 {offsets = [0, 0], sizes = [2, 256], strides = [1, 1]} : vector<4x256xf32> to vector<2x256xf32>
    %33 = arith.mulf %31, %32 : vector<2x256xf32>
    %34 = vector.extract_strided_slice %30 {offsets = [2, 0], sizes = [2, 256], strides = [1, 1]} : vector<4x256xf32> to vector<2x256xf32>
    %35 = arith.mulf %33, %34 : vector<2x256xf32>
    %c0_22 = arith.constant 0 : index
    %c0_23 = arith.constant 0 : index
    %c0_24 = arith.constant 0 : index
    %36 = vector.load %arg8[%c0_22, %c0_23, %c0_24] : memref<1x4x256xf32, #tpu.memory_space<vmem>>, vector<1x2x256xf32>
    %37 = vector.shape_cast %36 : vector<1x2x256xf32> to vector<2x256xf32>
    %38 = vector.shape_cast %33 : vector<2x256xf32> to vector<1x2x256xf32>
    tpu.vector_store %arg8[%c0_22, %c0_23, %c0_24], %38 {strides = array<i32>} : memref<1x4x256xf32, #tpu.memory_space<vmem>>, vector<1x2x256xf32>,
    %c0_25 = arith.constant 0 : index
    %c2 = arith.constant 2 : index
    %c0_26 = arith.constant 0 : index
    %39 = vector.load %arg8[%c0_25, %c2, %c0_26] : memref<1x4x256xf32, #tpu.memory_space<vmem>>, vector<1x2x256xf32>
    %40 = vector.shape_cast %39 : vector<1x2x256xf32> to vector<2x256xf32>
    %41 = vector.shape_cast %35 : vector<2x256xf32> to vector<1x2x256xf32>
    tpu.vector_store %arg8[%c0_25, %c2, %c0_26], %41 {strides = array<i32>} : memref<1x4x256xf32, #tpu.memory_space<vmem>>, vector<1x2x256xf32>,
    return
  }
  func.func @transform_0(%arg0: i32) -> (i32, i32, i32) {
    %c0_i32 = arith.constant 0 : i32
    %c0_i32_0 = arith.constant 0 : i32
    %c0_i32_1 = arith.constant 0 : i32
    return %arg0, %c0_i32, %c0_i32_0 : i32, i32, i32
  }
  func.func @transform_1(%arg0: i32) -> (i32, i32) {
    %c0_i32 = arith.constant 0 : i32
    %c0_i32_0 = arith.constant 0 : i32
    %c0_i32_1 = arith.constant 0 : i32
    return %c0_i32, %c0_i32_0 : i32, i32
  }
  func.func @transform_2(%arg0: i32) -> (i32, i32) {
    %c0_i32 = arith.constant 0 : i32
    %c0_i32_0 = arith.constant 0 : i32
    %c0_i32_1 = arith.constant 0 : i32
    return %c0_i32, %c0_i32_0 : i32, i32
  }
  func.func @transform_3(%arg0: i32) -> (i32, i32) {
    %c0_i32 = arith.constant 0 : i32
    %c0_i32_0 = arith.constant 0 : i32
    %c0_i32_1 = arith.constant 0 : i32
    return %c0_i32, %c0_i32_0 : i32, i32
  }
  func.func @transform_4(%arg0: i32) -> (i32, i32) {
    %c0_i32 = arith.constant 0 : i32
    %c0_i32_0 = arith.constant 0 : i32
    %c0_i32_1 = arith.constant 0 : i32
    return %c0_i32, %c0_i32_0 : i32, i32
  }
  func.func @transform_5(%arg0: i32) -> (i32, i32) {
    %c0_i32 = arith.constant 0 : i32
    %c0_i32_0 = arith.constant 0 : i32
    %c0_i32_1 = arith.constant 0 : i32
    return %c0_i32, %c0_i32_0 : i32, i32
  }
  func.func @transform_6(%arg0: i32) -> (i32, i32) {
    %c0_i32 = arith.constant 0 : i32
    %c0_i32_0 = arith.constant 0 : i32
    %c0_i32_1 = arith.constant 0 : i32
    return %c0_i32, %c0_i32_0 : i32, i32
  }
  func.func @transform_7(%arg0: i32) -> (i32, i32, i32) {
    %c0_i32 = arith.constant 0 : i32
    %c0_i32_0 = arith.constant 0 : i32
    %c0_i32_1 = arith.constant 0 : i32
    return %arg0, %c0_i32, %c0_i32_0 : i32, i32, i32
  }
}

</mosaic_0001>

<bundles_post_ra>
// kernel: tpu_custom_call.1
= control target key start
LH: loop header
LB: loop body
LE: loop exit
PB: predicated region body
PF: predicated region fallthrough
CT: control target
= control target key end

     0   :  { %12 = vsyncpa [#allocation3], 0  ;;  %s1459_s0 = inlined_call_operand.vmem [shape: f32[2,4,256], index: 0, kind: input, shape index: {}]   ;;  %s1460_s1 = inlined_call_operand.vmem [shape: bf16[4,4], index: 1, kind: input, shape index: {}]   ;;  %s1461_s2 = inlined_call_operand.vmem [shape: f32[4,1], index: 2, kind: input, shape index: {}]   ;;  %s1462_s3 = inlined_call_operand.vmem [shape: f32[256,16], index: 3, kind: input, shape index: {}]   ;;  %s1463_s4 = inlined_call_operand.vmem [shape: f32[16,256], index: 4, kind: input, shape index: {}]   ;;  %s1464_s5 = inlined_call_operand.vmem [shape: f32[256,16], index: 5, kind: input, shape index: {}]   ;;  %s1465_s6 = inlined_call_operand.vmem [shape: f32[16,256], index: 6, kind: input, shape index: {}]   ;;  %s1466_s7 = inlined_call_operand.hbm [shape: f32[2,4,256], index: 7, kind: output, shape index: {}]  }
   0x1   :  { %14 = vsyncpa [#allocation3 + $0x1], 0  ;;  %s1135_s24 = smov 0   ;;  %s1137_s25 = smov 0  }
   0x2   :  { %s1139_s26 = smov 0   ;;  %s1141_s27 = smov 0  }
   0x3 LB: > { %s1156_s28 = sadd.s32 4294967295, %s1090_s27   ;;  %s815_s29 = sadd.s32 4294967294, %s1090_s27   ;;  %s1090_s27 = sphi %s1141_s27, %s1472_s27   ;;  %s1086_s26 = sphi %s1139_s26, %s1471_s26   ;;  %s1082_s25 = sphi %s1137_s25, %s1470_s25   ;;  %s1078_s24 = sphi %s1135_s24, %s1469_s24  }
   0x4   : > { %s1160_s30 = sadd.s32 1, %s1090_s27   ;;  %s179_s8 = sadd.s32 1, %s1086_s26 }
   0x5   : > { %s176_s9 = ssub.s32 %s1090_s27, %s1160_s30  ;;  %p189_p0 = scmp.ne.s32.totalorder %s1086_s26, %s1082_s25 }
   0x6   : > { %p177_p1 = scmp.eq.s32.totalorder %s176_s9, 0  ;;  %p190_p2 = scmp.eq.s32.totalorder %s1156_s28, 1 }
   0x7   : > { %p195_p3 = scmp.ne.s32.totalorder %s1082_s25, %s1078_s24  ;;  %p196_p4 = scmp.eq.s32.totalorder %s815_s29, 1 }
   0x8   : > { %s1171_s10 = scalar_select %p177_p1, %s1086_s26, %s179_s8  }
   0x9   : > { %p1173_p5 = por %p190_p2, %p189_p0  ;;  %p1177_p6 = por %p196_p4, %p195_p3 }
   0xa   : > { %p818_p7 = scmp.ge.s32.totalorder %s1090_s27, 1  ;;  %p240_p8 = scmp.lt.s32.totalorder %s1090_s27, 3 }
   0xc   : > { %p241_p9 = pnand %p818_p7, %p240_p8 }
   0xd   : > { %p272_p10 = scmp.lt.s32.totalorder (!%p241_p9), %s1156_s28, 1  ;;  %v1092_v0 = vmov (!%p241_p9), 0   ;;  %v285_v1 = vld [vmem:[%s1461_s2] sm:$0xf] (!%p241_p9)  ;;  %v360_v3 = vld [vmem:[%s1462_s3 + $0x88] sm:$0xff] (!%p241_p9)  ;;  %v361_v8 = vld [vmem:[%s1462_s3 + $0x90] sm:$0xff] (!%p241_p9) }
   0xe   : > { %244 = sbr.rel (%p241_p9) target bundleno = 731 (0x2db), region = 48  ;;  %334 = vmatprep.mubr.bf16.mxu0 (!%p241_p9), %v1092_v0  ;;  %1018 = vset.pattern.permute.xlu0 (!%p241_p9), %v1092_v0  ;;  %v359_v2 = vld [vmem:[%s1462_s3 + $0x80] sm:$0xff] (!%p241_p9)  ;;  %v344_v6 = vld [vmem:[%s1462_s3 + $0x8] sm:$0xff] (!%p241_p9)  ;;  %v362_v9 = vld [vmem:[%s1462_s3 + $0x98] sm:$0xff] (!%p241_p9)  ;;  %vm295_vm0 = vcmask (!%p241_p9), 1041408   ;;  %vm291_vm1 = vcmask (!%p241_p9), 31744  }
   0xf   : > { %288 = vperm.xlu0 (!%p241_p9), %1018, %v285_v1   ;;  %v905_v4 = vpack.c.bf16 (!%p241_p9), %v360_v3, %v359_v2  ;;  %v343_v5 = vld [vmem:[%s1462_s3] sm:$0xff] (!%p241_p9)  ;;  %v909_v10 = vpack.c.bf16 (!%p241_p9), %v362_v9, %v361_v8  ;;  %v345_v11 = vld [vmem:[%s1462_s3 + $0x10] sm:$0xff] (!%p241_p9)  ;;  %v346_v12 = vld [vmem:[%s1462_s3 + $0x18] sm:$0xff] (!%p241_p9)  ;;  %vm565_vm2 = vcmask (!%p241_p9), 130048   ;;  %s834_s14 = sshll.u32 (!%p241_p9), %s1156_s28, 7 }
  0x10   : > { %v907_v7 = vpack.c.bf16 (!%p241_p9), %v344_v6, %v343_v5  ;;  %v468_v14 = vld [vmem:[%s1464_s5 + $0x80] sm:$0xff] (!%p241_p9)  ;;  %v469_v15 = vld [vmem:[%s1464_s5 + $0x88] sm:$0xff] (!%p241_p9)  ;;  %v911_v16 = vpack.c.bf16 (!%p241_p9), %v346_v12, %v345_v11  ;;  %v365_v29 = vld [vmem:[%s1462_s3 + $0xb0] sm:$0xff] (!%p241_p9)  ;;  %s1417_s20 = scalar_lea.hbm (!%p241_p9), %s1466_s7, %s834_s14 }
  0x11   : > { %906 = vmatprep.subr.bf16.mxu1 (!%p241_p9), %v905_v4  ;;  %v363_v19 = vld [vmem:[%s1462_s3 + $0xa0] sm:$0xff] (!%p241_p9)  ;;  %v364_v20 = vld [vmem:[%s1462_s3 + $0xa8] sm:$0xff] (!%p241_p9)  ;;  %v937_v26 = vpack.c.bf16 (!%p241_p9), %v469_v15, %v468_v14  ;;  %v470_v30 = vld [vmem:[%s1464_s5 + $0x90] sm:$0xff] (!%p241_p9) }
  0x12   : > { %908 = vmatpush3.bf16.msra.mxu1 (!%p241_p9), %v907_v7  ;;  %v913_v21 = vpack.c.bf16 (!%p241_p9), %v364_v20, %v363_v19  ;;  %v347_v22 = vld [vmem:[%s1462_s3 + $0x20] sm:$0xff] (!%p241_p9)  ;;  %v348_v23 = vld [vmem:[%s1462_s3 + $0x28] sm:$0xff] (!%p241_p9)  ;;  %v471_v31 = vld [vmem:[%s1464_s5 + $0x98] sm:$0xff] (!%p241_p9) }
  0x13   : > { %910 = vmatprep.subr.bf16.mxu1 (!%p241_p9), %v909_v10  ;;  %v452_v27 = vld [vmem:[%s1464_s5] sm:$0xff] (!%p241_p9)  ;;  %v453_v28 = vld [vmem:[%s1464_s5 + $0x8] sm:$0xff] (!%p241_p9)  ;;  %v915_v32 = vpack.c.bf16 (!%p241_p9), %v348_v23, %v347_v22  ;;  %v366_v33 = vld [vmem:[%s1462_s3 + $0xb8] sm:$0xff] (!%p241_p9)  ;;  %v941_v41 = vpack.c.bf16 (!%p241_p9), %v471_v31, %v470_v30 }
  0x14   : > { %v917_v34 = vpack.c.bf16 (!%p241_p9), %v366_v33, %v365_v29  ;;  %v349_v35 = vld [vmem:[%s1462_s3 + $0x30] sm:$0xff] (!%p241_p9)  ;;  %v350_v36 = vld [vmem:[%s1462_s3 + $0x38] sm:$0xff] (!%p241_p9)  ;;  %v284_v37 = vld [vmem:[%s1460_s1] sm:$0x3] (!%p241_p9)  ;;  %v939_v38 = vpack.c.bf16 (!%p241_p9), %v453_v28, %v452_v27 }
  0x15   : > { %s273_s19 = scalar_select %p272_p10, %s1156_s28, 1  ;;  %v367_v39 = vld [vmem:[%s1462_s3 + $0xc0] sm:$0xff]  ;;  %v368_v40 = vld [vmem:[%s1462_s3 + $0xc8] sm:$0xff]  ;;  %v454_v42 = vld [vmem:[%s1464_s5 + $0x10] sm:$0xff]  ;;  %v919_v46 = vpack.c.bf16 %v350_v36, %v349_v35 }
  0x16   : > { %912 = vmatpush3.bf16.msra.mxu1 %v911_v16  ;;  %v455_v43 = vld [vmem:[%s1464_s5 + $0x18] sm:$0xff]  ;;  %v472_v44 = vld [vmem:[%s1464_s5 + $0xa0] sm:$0xff]  ;;  %v473_v45 = vld [vmem:[%s1464_s5 + $0xa8] sm:$0xff]  ;;  %v921_v47 = vpack.c.bf16 %v368_v40, %v367_v39  ;;  %s1094_s28 = smov [#allocation2]  }
  0x17   : > { %s833_s29 = sshll.u32 %s273_s19, 3  ;;  %914 = vmatprep.subr.bf16.mxu1 %v913_v21  ;;  %v351_v48 = vld [vmem:[%s1462_s3 + $0x40] sm:$0xff]  ;;  %v352_v49 = vld [vmem:[%s1462_s3 + $0x48] sm:$0xff]  ;;  %v943_v50 = vpack.c.bf16 %v455_v43, %v454_v42  ;;  %v369_v51 = vld [vmem:[%s1462_s3 + $0xd0] sm:$0xff]  ;;  %v945_v53 = vpack.c.bf16 %v473_v45, %v472_v44  ;;  %s1032_s22 = sshll.u32 %s1094_s28, 4  ;;  %s1033_s22 = int_to_ptr.vmem [resolvable:$false] %s1032_s22 }
  0x18   : > { %s276_s17 = scalar_lea.vmem %s1459_s0, %s833_s29  ;;  %v370_v52 = vld [vmem:[%s1462_s3 + $0xd8] sm:$0xff]  ;;  %v456_v54 = vld [vmem:[%s1464_s5 + $0x20] sm:$0xff]  ;;  %v457_v55 = vld [vmem:[%s1464_s5 + $0x28] sm:$0xff]  ;;  %v923_v58 = vpack.c.bf16 %v352_v49, %v351_v48  ;;  %s269_s29 = sand.u32 1, %s1082_s25  }
  0x19   : > { %v278_v13 = vld [vmem:[%s276_s17] sm:$0xff]  ;;  %v474_v56 = vld [vmem:[%s1464_s5 + $0xb0] sm:$0xff]  ;;  %v475_v57 = vld [vmem:[%s1464_s5 + $0xb8] sm:$0xff]  ;;  %v925_v59 = vpack.c.bf16 %v370_v52, %v369_v51  ;;  %v947_v62 = vpack.c.bf16 %v457_v55, %v456_v54  ;;  %v1093_v54 = vmov 0.0   ;;  %s819_s13 = sshll.u32 %s269_s29, 3  ;;  %s742_s19 = scalar_lea.sflag [#allocation3], %s269_s29 }
  0x1a   : > { %v280_v17 = vcombine.high %v278_v13, %v278_v13  ;;  %v282_v18 = vpack.c.bf16 %v278_v13, %v278_v13  ;;  %916 = vmatpush3.bf16.msra.mxu1 %v915_v32  ;;  %v353_v60 = vld [vmem:[%s1462_s3 + $0x50] sm:$0xff]  ;;  %v354_v61 = vld [vmem:[%s1462_s3 + $0x58] sm:$0xff]  ;;  %v371_v63 = vld [vmem:[%s1462_s3 + $0xe0] sm:$0xff]  ;;  %v949_v1 = vpack.c.bf16 %v475_v57, %v474_v56  ;;  %s271_s15 = scalar_lea.vmem [#allocation2], %s819_s13  ;;  %s1034_s23 = scalar_lea.vmem %s1033_s22, 256 }
  0x1b   : > { %918 = vmatprep.subr.bf16.mxu1 %v917_v34  ;;  %v372_v0 = vld [vmem:[%s1462_s3 + $0xe8] sm:$0xff]  ;;  %v458_v2 = vld [vmem:[%s1464_s5 + $0x30] sm:$0xff]  ;;  %v459_v3 = vld [vmem:[%s1464_s5 + $0x38] sm:$0xff]  ;;  %v927_v6 = vpack.c.bf16 %v354_v61, %v353_v60  ;;  %s756_s16 = sshll.u32 %s271_s15, 4  ;;  %s1419_s16 = int_to_ptr.vmem [resolvable:$true] %s756_s16 }
  0x1c   : > { %v283_v24 = vpack.c.bf16 %v280_v17, %v280_v17  ;;  %v297_v25 = vsel %vm295_vm0, %v282_v18, 0  ;;  %v476_v4 = vld [vmem:[%s1464_s5 + $0xc0] sm:$0xff]  ;;  %v477_v5 = vld [vmem:[%s1464_s5 + $0xc8] sm:$0xff]  ;;  %v929_v7 = vpack.c.bf16 %v372_v0, %v371_v63  ;;  %v951_v10 = vpack.c.bf16 %v459_v3, %v458_v2  ;;  %v478_v14 = vld [vmem:[%s1464_s5 + $0xd0] sm:$0xff]  ;;  %s1028_s21 = scalar_lea.vmem %s1419_s16, 128  ;;  %p1035_p0 = scmp.lt.s32.totalorder %s1419_s16, %s1033_s22 }
  0x1d   : > { %v355_v8 = vld [vmem:[%s1462_s3 + $0x60] sm:$0xff]  ;;  %v356_v9 = vld [vmem:[%s1462_s3 + $0x68] sm:$0xff]  ;;  %v953_v11 = vpack.c.bf16 %v477_v5, %v476_v4  ;;  %v479_v15 = vld [vmem:[%s1464_s5 + $0xd8] sm:$0xff]  ;;  %p1029_p11 = scmp.ne.s32.totalorder %s1419_s16, %s1028_s21  ;;  %p1036_p1 = scmp.lt.s32.totalorder %s1034_s23, %s1028_s21 }
  0x1e   : > { %822 = vmatprep.subr.msk.bf16.mxu0 %vm295_vm0, %v283_v24  ;;  %920 = vmatpush3.bf16.msra.mxu1 %v919_v46  ;;  %v460_v12 = vld [vmem:[%s1464_s5 + $0x40] sm:$0xff]  ;;  %v461_v13 = vld [vmem:[%s1464_s5 + $0x48] sm:$0xff]  ;;  %v931_v16 = vpack.c.bf16 %v356_v9, %v355_v8  ;;  %v957_v18 = vpack.c.bf16 %v479_v15, %v478_v14  ;;  %v462_v19 = vld [vmem:[%s1464_s5 + $0x50] sm:$0xff] }
  0x1f   : > { %303 = vmatpush1.bf16.msra.mxu0 %v297_v25  ;;  %922 = vmatprep.subr.bf16.mxu1 %v921_v47  ;;  %v955_v17 = vpack.c.bf16 %v461_v13, %v460_v12  ;;  %v463_v20 = vld [vmem:[%s1464_s5 + $0x58] sm:$0xff]  ;;  %v480_v21 = vld [vmem:[%s1464_s5 + $0xe0] sm:$0xff]  ;;  %v481_v22 = vld [vmem:[%s1464_s5 + $0xe8] sm:$0xff]  ;;  %p1030_p12 = pnand %p1029_p11, %p1173_p5  ;;  %p1037_p2 = por %p1036_p1, %p1035_p0 }
  0x20   : > { %938 = vmatprep.subr.bf16.mxu0 %v937_v26  ;;  %v959_v23 = vpack.c.bf16 %v463_v20, %v462_v19  ;;  %v961_v24 = vpack.c.bf16 %v481_v22, %v480_v21  ;;  %v464_v25 = vld [vmem:[%s1464_s5 + $0x60] sm:$0xff]  ;;  %v465_v26 = vld [vmem:[%s1464_s5 + $0x68] sm:$0xff]  ;;  %v373_v28 = vld [vmem:[%s1462_s3 + $0xf0] sm:$0xff] }
  0x21   : > { %v963_v27 = vpack.c.bf16 %v465_v26, %v464_v25  ;;  %v374_v29 = vld [vmem:[%s1462_s3 + $0xf8] sm:$0xff]  ;;  %v482_v30 = vld [vmem:[%s1464_s5 + $0xf0] sm:$0xff]  ;;  %v562_v47 = vld [vmem:[%s1463_s4 + $0x8] sm:$0xff]  ;;  %p1031_p13 = pneg %p1030_p12 }
  0x22   : > { %823 = vmatmul.mubr.msk.bf16.vlgmr.msra.gmra.mrb[0].mxu0 %vm291_vm1, %v284_v37  ;;  %924 = vmatpush3.bf16.msra.mxu1 %v923_v58  ;;  %v933_v31 = vpack.c.bf16 %v374_v29, %v373_v28  ;;  %v483_v32 = vld [vmem:[%s1464_s5 + $0xf8] sm:$0xff]  ;;  %v357_v33 = vld [vmem:[%s1462_s3 + $0x70] sm:$0xff]  ;;  %v641_v49 = vld [vmem:[%s1465_s6 + $0x8] sm:$0xff] }
  0x23   : > { %940 = vmatpush3.bf16.msra.mxu0 %v939_v38  ;;  %926 = vmatprep.subr.bf16.mxu1 %v925_v59  ;;  %v358_v34 = vld [vmem:[%s1462_s3 + $0x78] sm:$0xff]  ;;  %v965_v35 = vpack.c.bf16 %v483_v32, %v482_v30  ;;  %v466_v37 = vld [vmem:[%s1464_s5 + $0x70] sm:$0xff]  ;;  %v561_v52 = vld [vmem:[%s1463_s4] sm:$0xff]  ;;  %p1038_p3 = pnand %p1037_p2, %p1031_p13 }
  0x24   : > { %942 = vmatprep.subr.bf16.mxu0 %v941_v41  ;;  %v935_v36 = vpack.c.bf16 %v358_v34, %v357_v33  ;;  %v467_v38 = vld [vmem:[%s1464_s5 + $0x78] sm:$0xff]  ;;  %v640_v57 = vld [vmem:[%s1465_s6] sm:$0xff]  ;;  %v642_v58 = vld [vmem:[%s1465_s6 + $0x10] sm:$0xff] }
  0x25   : > { %v967_v39 = vpack.c.bf16 %v467_v38, %v466_v37  ;;  %v564_v48 = vld [vmem:[%s1463_s4 + $0x18] sm:$0xff]  ;;  %v975_v59 = vpack.c.bf16 %v642_v58, %v640_v57 }
  0x26   : > { %928 = vmatpush3.bf16.msra.mxu1 %v927_v6  ;;  %v643_v51 = vld [vmem:[%s1465_s6 + $0x18] sm:$0xff] }
  0x27   : > { %944 = vmatpush3.bf16.msra.mxu0 %v943_v50  ;;  %930 = vmatprep.subr.bf16.mxu1 %v929_v7  ;;  %v969_v50 = vpack.c.bf16 %v564_v48, %v562_v47  ;;  %v973_v55 = vpack.c.bf16 %v643_v51, %v641_v49 }
  0x28   : > { %946 = vmatprep.subr.bf16.mxu0 %v945_v53  ;;  %v563_v53 = vld [vmem:[%s1463_s4 + $0x10] sm:$0xff] }
  0x29   : > { %v971_v56 = vpack.c.bf16 %v563_v53, %v561_v52 }
  0x2a   : > { %932 = vmatpush3.bf16.msra.mxu1 %v931_v16 }
  0x2b   : > { %948 = vmatpush3.bf16.msra.mxu0 %v947_v62  ;;  %934 = vmatprep.subr.bf16.mxu1 %v933_v31 }
  0x2c   : > { %950 = vmatprep.subr.bf16.mxu0 %v949_v1 }
  0x2e   : > { %936 = vmatpush3.bf16.msra.mxu1 %v935_v36 }
  0x2f   : > { %952 = vmatpush3.bf16.msra.mxu0 %v951_v10  ;;  %970 = vmatprep.subr.bf16.mxu1 %v969_v50 }
  0x30   : > { %954 = vmatprep.subr.bf16.mxu0 %v953_v11 }
  0x33   : > { %956 = vmatpush3.bf16.msra.mxu0 %v955_v17 }
  0x34   : > { %958 = vmatprep.subr.bf16.mxu0 %v957_v18 }
  0x37   : > { %960 = vmatpush3.bf16.msra.mxu0 %v959_v23 }
  0x38   : > { %962 = vmatprep.subr.bf16.mxu0 %v961_v24 }
  0x3b   : > { %964 = vmatpush3.bf16.msra.mxu0 %v963_v27 }
  0x3c   : > { %966 = vmatprep.subr.bf16.mxu0 %v965_v35 }
  0x3f   : > { %968 = vmatpush3.bf16.msra.mxu0 %v967_v39 }
  0x40   : > { %974 = vmatprep.subr.bf16.mxu0 %v973_v55 }
  0x8e   : > { %v289_v40 = vpop.permute.xlu0 %288 }
  0xf5   : > { %v336_v41 = vpop.f32.mrb[0].mxu0 }
  0xf6   : > { %v338_v42 = vpop.f32.mrb[1].mxu0  ;;  %v337_v45 = vadd.f32 %v336_v41, %v289_v40 }
  0xf7   : > { %v339_v43 = vadd.f32 %v338_v42, %v289_v40  ;;  %v340_v44 = vpop.f32.mrb[2].mxu0 }
  0xf8   : > { %v341_v46 = vpop.f32.mrb[3].mxu0 }
  0xf9   : > { %439 = vmatprep.mubr.f32.mxu1 %v339_v43  ;;  %548 = vmatprep.mubr.f32.mxu0 %v339_v43 }
  0xfa   : > { %440 = vmatmul.mubr.f32.vlgmr.msra.gmra.mrb[0].mxu1 %v337_v45  ;;  %549 = vmatmul.mubr.f32.vlgmr.msra.gmra.mrb[4].mxu0 %v337_v45 }
  0xfb   : > { %633 = vmatprep.mubr.f32.mxu1 %v1093_v54  ;;  %711 = vmatprep.mubr.f32.mxu0 %v1093_v54 }
  0xfc   : > { %972 = vmatpush1.bf16.msra.mxu1 %v971_v56  ;;  %976 = vmatpush1.bf16.msra.mxu0 %v975_v59 }
 0x1cd   : > { %v867_v60 = vpop.f32.mrb[0].mxu1  ;;  %v902_v61 = vpop.f32.mrb[4].mxu0 }
 0x1ce   : > { %v868_v62 = vpop.f32.mrb[1].mxu1  ;;  %v903_v63 = vpop.f32.mrb[5].mxu0 }
 0x1cf   : > { %v869_v0 = vadd.f32 %v868_v62, %v867_v60  ;;  %v904_v1 = vadd.f32 %v903_v63, %v902_v61 }
 0x1d1   : > { %v824_v2 = vmul.f32 -0.0625, %v869_v0  ;;  %v825_v3 = vmul.f32 -0.0625, %v904_v1 }
 0x1d3   : > { %v447_v4 = vmul.f32 1.442695, %v824_v2  ;;  %v556_v5 = vmul.f32 1.442695, %v825_v3 }
 0x1d5   : > { %1020 = vpow2.f32 %v447_v4 }
 0x1d6   : > { %1022 = vpow2.f32 %v556_v5 }
 0x1df   : > { %v1021_v6 = vpop.eup %1020 }
 0x1e0   : > { %v1023_v7 = vpop.eup %1022  ;;  %v449_v8 = vadd.f32 1.0, %v1021_v6 }
 0x1e1   : > { %v558_v9 = vadd.f32 1.0, %v1023_v7 }
 0x1e2   : > { %1024 = vrcp.f32 %v449_v8 }
 0x1e3   : > { %1026 = vrcp.f32 %v558_v9 }
 0x1ec   : > { %v1025_v10 = vpop.eup %1024 }
 0x1ed   : > { %v1027_v11 = vpop.eup %1026  ;;  %826 = vmatmul.mubr.msk.f32.vlgmr.msra.gmra.mrb[2].mxu1 %vm565_vm2, %v1025_v10 }
 0x1ee   : > { %827 = vmatmul.mubr.msk.f32.vlgmr.msra.gmra.mrb[6].mxu0 %vm565_vm2, %v1027_v11 }
 0x2c0   : > { %v635_v12 = vpop.f32.mrb[2].mxu1 }
 0x2c1   : > { %v713_v13 = vpop.f32.mrb[6].mxu0  ;;  %v637_v14 = vpop.f32.mrb[3].mxu1 }
 0x2c2   : > { %v718_v15 = vmul.f32 %v713_v13, %v635_v12  ;;  %v715_v16 = vpop.f32.mrb[7].mxu0 }
 0x2c3   : > { %v719_v17 = vmul.f32 %v715_v16, %v637_v14 }
 0x2c4   : > { %v720_v18 = vmul.f32 %v718_v15, %v337_v45  ;;  %v724_v19 = vrot.slane %v718_v15, 2 }
 0x2c5   : > { %v721_v20 = vmul.f32 %v719_v17, %v339_v43  ;;  %v725_v21 = vrot.slane %v719_v17, 2 }
 0x2c6   : > { %v728_v22 = vmul.f32 %v724_v19, %v720_v18 }
 0x2c7   : > { %v729_v23 = vmul.f32 %v725_v21, %v721_v20  ;;  %v732_v24 = vcombine.low %v720_v18, %v721_v20 }
 0x2c9   : > { %v737_v25 = vcombine.low %v728_v22, %v729_v23  ;;  %734 = vst [vmem:[%s271_s15] sm:$0x33] %v732_v24 }
 0x2cb   : > { %v738_v26 = vrot.slane %v737_v25, 6 }
 0x2cd   : > { %740 = vst [vmem:[%s271_s15] sm:$0xcc] %v738_v26 }
 0x2ce   : > { %1041 = shalt.err (!%p1038_p3)
}
 0x2cf   : > { %s1042_s8 = scalar_lea.hbm %s1417_s20, 128  ;;  %s1046_s13 = scalar_lea.hbm %s1466_s7, 256 }
 0x2d0   : > { %p1043_p4 = scmp.ne.s32.totalorder %s1417_s20, %s1042_s8  ;;  %p1047_p9 = scmp.lt.u32.totalorder %s1417_s20, %s1466_s7 }
 0x2d1   : > { %p1048_p10 = scmp.lt.u32.totalorder %s1046_s13, %s1042_s8  ;;  %p1050_p12 = scmp.lt.u32.totalorder %s1042_s8, %s1417_s20 }
 0x2d2   : > { %p1044_p7 = pnand %p1043_p4, %p1173_p5 }
 0x2d3   : > { %p1049_p11 = por %p1048_p10, %p1047_p9 }
 0x2d4   : > { %p1045_p8 = pneg %p1044_p7 }
 0x2d5   : > { %p1051_p13 = por %p1050_p12, %p1049_p11 }
 0x2d7   : > { %p1052_p0 = pnand %p1051_p13, %p1045_p8 }
 0x2d9   : > { %1055 = shalt.err (!%p1052_p0)
}
 0x2da   : > { %977 = dma.vmem_to_hbm [thread:$0]  (%p1173_p5), %s1419_s16, 128, %s1417_s20, %s742_s19  }
 0x2db PF: > { %p983_p1 = scmp.ge.s32.totalorder %s1090_s27, 2  ;;  %s768_s17 = sand.u32 1, %s1078_s24  }
 0x2dc   : > { %s769_s18 = scalar_lea.sflag [#allocation3], %s768_s17 }
 0x2dd   : > { %p980_p2 = pnand %p983_p1, %p1177_p6 }
 0x2df   : > { %1073 = dma.done.wait (!%p980_p2), %s769_s18, 128  }
 0x2e0   : > { %1075 = vsyncadd (!%p980_p2), %s769_s18, 4294967168  ;;  %p17_p3 = scmp.ge.s32.totalorder %s1160_s30, 4   ;;  %s1469_s24 = smov %s1082_s25 }
 0x2e1   : > { %s1470_s25 = smov %s1086_s26  ;;  %s1471_s26 = smov %s1171_s10 }
 0x2e2   : > { %s1472_s27 = smov %s1160_s30  ;;  %19 = sbr.rel (!%p17_p3) target bundleno = 3 (0x3), region = 83 }
 0x2e9   :  { %774 = vsyncpa [#allocation3], 1 }
 0x2ea   :  { %776 = vsyncpa [#allocation3 + $0x1], 1 }

</bundles_post_ra>
